<compile_context>
chip_gen: v6e
topology: v6e:2x2x1
jax: 0.10.0
libtpu: 0.0.40
codegen_flags: <defaults>
</compile_context>

<pallas_src>
import jax
import jax.numpy as jnp
from jax.experimental import pallas as pl
from jax.experimental.pallas import tpu as pltpu

D_IN = 16 * 5 * 5          # 400
H1, H2, D_OUT = 120, 84, 10
H1_PAD, H2_PAD, OUT_PAD = 128, 128, 128   # lane-dense padded widths
_MIN_ROWS_PER_CORE = 2048                 # only split the grid if each step stays >= this


def _round_up(n, m):
    return (n + m - 1) // m * m


def _cdiv(a, b):
    return (a + b - 1) // b


def _choose_batch_tile(B, block_b):
    """Balanced batch tile: minimal padding, >=2 grid steps when B is large (v7x)."""
    n_steps = max(1, _cdiv(B, block_b))
    if n_steps == 1 and B >= 2 * _MIN_ROWS_PER_CORE:
        n_steps = 2                       # let both v7x TensorCores get a tile
    tb = _round_up(_cdiv(B, n_steps), 8)  # sublane-aligned
    return tb, n_steps * tb


def _mlp_kernel(x_ref, w1_ref, b1_ref, w2_ref, b2_ref, w3_ref, b3_ref, o_ref):
    # Cast x f32 -> bf16 in VMEM (saves a whole wrapper-side HBM pad/cast pass).
    x = x_ref[...].astype(jnp.bfloat16)
    # fc1 + relu  (bf16 MXU operands, f32 accumulation; bias/ReLU in f32)
    h1 = jnp.dot(x, w1_ref[...], preferred_element_type=jnp.float32)
    h1 = jnp.maximum(h1 + b1_ref[...], 0.0)
    # fc2 + relu
    h2 = jnp.dot(h1.astype(jnp.bfloat16), w2_ref[...],
                 preferred_element_type=jnp.float32)
    h2 = jnp.maximum(h2 + b2_ref[...], 0.0)
    # fc3 (logits, no activation) — lane-dense 128-wide bf16 store
    out = jnp.dot(h2.astype(jnp.bfloat16), w3_ref[...],
                  preferred_element_type=jnp.float32)
    o_ref[...] = (out + b3_ref[...]).astype(o_ref.dtype)


def cifar_server_forward(x, params, *, block_b=4096):
    """x: [B, 400] float32. params: dict with w1,b1,w2,b2,w3,b3 ([in,out] / [1,out])."""
    B, k = x.shape
    assert k == D_IN, x.shape

    tb, b_pad = _choose_batch_tile(B, block_b)

    # Pad the batch only (f32 stays f32 — cast happens inside the kernel).
    x_p = x if b_pad == B else jnp.pad(x, ((0, b_pad - B), (0, 0)))

    def pad2(a, rows, cols, dtype):
        return jnp.pad(
            a, ((0, rows - a.shape[0]), (0, cols - a.shape[1]))).astype(dtype)

    # Zero-padded columns/rows are inert: padded hidden units get bias 0 and
    # contribute nothing downstream; padded logits are sliced off below.
    w1 = pad2(params["w1"], D_IN, H1_PAD, jnp.bfloat16)
    w2 = pad2(params["w2"], H1_PAD, H2_PAD, jnp.bfloat16)
    w3 = pad2(params["w3"], H2_PAD, OUT_PAD, jnp.bfloat16)
    b1 = pad2(params["b1"], 1, H1_PAD, jnp.float32)
    b2 = pad2(params["b2"], 1, H2_PAD, jnp.float32)
    b3 = pad2(params["b3"], 1, OUT_PAD, jnp.float32)

    grid = (b_pad // tb,)
    resident = lambda shape: pl.BlockSpec(shape, lambda i: (0, 0))

    flops = 2 * b_pad * (D_IN * H1_PAD + H1_PAD * H2_PAD + H2_PAD * OUT_PAD)
    bytes_accessed = int(
        x_p.size * 4                                   # f32 activations in
        + (w1.size + w2.size + w3.size) * 2            # bf16 weights
        + (b1.size + b2.size + b3.size) * 4            # f32 biases
        + b_pad * OUT_PAD * 2)                         # bf16 logits out

    out = pl.pallas_call(
        _mlp_kernel,
        out_shape=jax.ShapeDtypeStruct((b_pad, OUT_PAD), jnp.bfloat16),
        grid=grid,
        in_specs=[
            pl.BlockSpec((tb, D_IN), lambda i: (i, 0)),   # batch-tiled, pipelined
            resident(w1.shape), resident(b1.shape),
            resident(w2.shape), resident(b2.shape),
            resident(w3.shape), resident(b3.shape),
        ],
        out_specs=pl.BlockSpec((tb, OUT_PAD), lambda i: (i, 0)),
        compiler_params=pltpu.CompilerParams(
            dimension_semantics=("parallel",),            # shards batch across v7x's 2 TCs
            vmem_limit_bytes=48 * 1024 * 1024),           # fits tb=4096 on every generation
        cost_estimate=pl.CostEstimate(
            flops=flops, transcendentals=0, bytes_accessed=bytes_accessed),
    )(x_p, w1, b1, w2, b2, w3, b3)

    return out[:B, :D_OUT].astype(jnp.float32)


def init_params(key):
    """Deterministic init matching PyTorch nn.Linear (U(-1/sqrt(fan_in), 1/sqrt(fan_in)))."""
    dims = [(D_IN, H1), (H1, H2), (H2, D_OUT)]
    params = {}
    keys = jax.random.split(key, 2 * len(dims))
    for i, (fan_in, fan_out) in enumerate(dims):
        bound = 1.0 / jnp.sqrt(jnp.float32(fan_in))
        params[f"w{i + 1}"] = jax.random.uniform(
            keys[2 * i], (fan_in, fan_out), jnp.float32, minval=-bound, maxval=bound)
        params[f"b{i + 1}"] = jax.random.uniform(
            keys[2 * i + 1], (1, fan_out), jnp.float32, minval=-bound, maxval=bound)
    return params


def _reference_forward_f32(x, params):
    h1 = jnp.maximum(x @ params["w1"] + params["b1"], 0.0)
    h2 = jnp.maximum(h1 @ params["w2"] + params["b2"], 0.0)
    return h2 @ params["w3"] + params["b3"]


def _reference_forward_bf16(x, params):
    """Same math with bf16 rounding of matmul operands (f32 accumulation) and bf16 logits."""
    r = lambda a: a.astype(jnp.bfloat16).astype(jnp.float32)
    h1 = jnp.maximum(r(x) @ r(params["w1"]) + params["b1"], 0.0)
    h2 = jnp.maximum(r(h1) @ r(params["w2"]) + params["b2"], 0.0)
    out = r(h2) @ r(params["w3"]) + params["b3"]
    return out.astype(jnp.bfloat16).astype(jnp.float32)   # kernel stores bf16 logits


if __name__ == "__main__":
    key = jax.random.PRNGKey(0)
    k_x, k_p = jax.random.split(key)

    params = init_params(k_p)

    # Small demo batch (features = 16*5*5 = 400 as the module implies).
    B = 8
    x = jax.random.normal(k_x, (B, D_IN), jnp.float32)
    out = jax.block_until_ready(cifar_server_forward(x, params))
    assert out.shape == (B, D_OUT), out.shape
    assert jnp.allclose(out, _reference_forward_bf16(x, params), atol=2e-2, rtol=2e-2)
    assert jnp.allclose(out, _reference_forward_f32(x, params), atol=8e-2, rtol=8e-2)

    # Ragged batch (not a multiple of the sublane group) to exercise tail padding.
    B2 = 10
    x2 = jax.random.normal(jax.random.PRNGKey(1), (B2, D_IN), jnp.float32)
    out2 = jax.block_until_ready(cifar_server_forward(x2, params))
    assert out2.shape == (B2, D_OUT), out2.shape
    assert jnp.allclose(out2, _reference_forward_bf16(x2, params), atol=2e-2, rtol=2e-2)

    print("KERNEL_OK")
</pallas_src>

<mosaic_0001>
module attributes {stable_mosaic.version = 11 : i64} {
  func.func @_mlp_kernel(%arg0: i32, %arg1: memref<8x400xf32, #tpu.memory_space<vmem>>, %arg2: memref<400x128xbf16, #tpu.memory_space<vmem>>, %arg3: memref<1x128xf32, #tpu.memory_space<vmem>>, %arg4: memref<128x128xbf16, #tpu.memory_space<vmem>>, %arg5: memref<1x128xf32, #tpu.memory_space<vmem>>, %arg6: memref<128x128xbf16, #tpu.memory_space<vmem>>, %arg7: memref<1x128xf32, #tpu.memory_space<vmem>>, %arg8: memref<8x128xbf16, #tpu.memory_space<vmem>>) attributes {dimension_semantics = [#tpu.dimension_semantics<parallel>], iteration_bounds = array<i64: 1>, scalar_prefetch = 0 : i64, scratch_operands = 0 : i64, tpu.core_type = #tpu.core_type<tc>, window_params = [{transform_indices = @transform_0, window_bounds = array<i64: 8, 400>}, {pipeline_mode = #tpu.pipeline_mode<synchronous>, transform_indices = @transform_1, window_bounds = array<i64: 400, 128>}, {pipeline_mode = #tpu.pipeline_mode<synchronous>, transform_indices = @transform_2, window_bounds = array<i64: 1, 128>}, {pipeline_mode = #tpu.pipeline_mode<synchronous>, transform_indices = @transform_3, window_bounds = array<i64: 128, 128>}, {pipeline_mode = #tpu.pipeline_mode<synchronous>, transform_indices = @transform_4, window_bounds = array<i64: 1, 128>}, {pipeline_mode = #tpu.pipeline_mode<synchronous>, transform_indices = @transform_5, window_bounds = array<i64: 128, 128>}, {pipeline_mode = #tpu.pipeline_mode<synchronous>, transform_indices = @transform_6, window_bounds = array<i64: 1, 128>}, {transform_indices = @transform_7, window_bounds = array<i64: 8, 128>}]} {
    %c0 = arith.constant 0 : index
    %c0_0 = arith.constant 0 : index
    %0 = vector.load %arg1[%c0, %c0_0] : memref<8x400xf32, #tpu.memory_space<vmem>>, vector<8x400xf32>
    %1 = arith.truncf %0 : vector<8x400xf32> to vector<8x400xbf16>
    %c0_1 = arith.constant 0 : index
    %c0_2 = arith.constant 0 : index
    %2 = vector.load %arg2[%c0_1, %c0_2] : memref<400x128xbf16, #tpu.memory_space<vmem>>, vector<400x128xbf16>
    %cst = arith.constant dense<0.000000e+00> : vector<8x128xf32>
    %3 = tpu.matmul %1, %2, %cst {dimension_numbers = #tpu.dot_dimension_numbers<[1], [0], [0], [1], [0, 0, 1, 1], [], []>} : vector<8x400xbf16>, vector<400x128xbf16>, vector<8x128xf32> -> vector<8x128xf32>
    %c0_3 = arith.constant 0 : index
    %c0_4 = arith.constant 0 : index
    %4 = vector.load %arg3[%c0_3, %c0_4] : memref<1x128xf32, #tpu.memory_space<vmem>>, vector<1x128xf32>
    %5 = vector.broadcast %4 : vector<1x128xf32> to vector<8x128xf32>
    %6 = arith.addf %3, %5 : vector<8x128xf32>
    %cst_5 = arith.constant 0.000000e+00 : f32
    %7 = vector.broadcast %cst_5 : f32 to vector<8x128xf32>
    %8 = arith.maximumf %6, %7 : vector<8x128xf32>
    %9 = arith.truncf %8 : vector<8x128xf32> to vector<8x128xbf16>
    %c0_6 = arith.constant 0 : index
    %c0_7 = arith.constant 0 : index
    %10 = vector.load %arg4[%c0_6, %c0_7] : memref<128x128xbf16, #tpu.memory_space<vmem>>, vector<128x128xbf16>
    %cst_8 = arith.constant dense<0.000000e+00> : vector<8x128xf32>
    %11 = tpu.matmul %9, %10, %cst_8 {dimension_numbers = #tpu.dot_dimension_numbers<[1], [0], [0], [1], [0, 0, 1, 1], [], []>} : vector<8x128xbf16>, vector<128x128xbf16>, vector<8x128xf32> -> vector<8x128xf32>
    %c0_9 = arith.constant 0 : index
    %c0_10 = arith.constant 0 : index
    %12 = vector.load %arg5[%c0_9, %c0_10] : memref<1x128xf32, #tpu.memory_space<vmem>>, vector<1x128xf32>
    %13 = vector.broadcast %12 : vector<1x128xf32> to vector<8x128xf32>
    %14 = arith.addf %11, %13 : vector<8x128xf32>
    %cst_11 = arith.constant 0.000000e+00 : f32
    %15 = vector.broadcast %cst_11 : f32 to vector<8x128xf32>
    %16 = arith.maximumf %14, %15 : vector<8x128xf32>
    %17 = arith.truncf %16 : vector<8x128xf32> to vector<8x128xbf16>
    %c0_12 = arith.constant 0 : index
    %c0_13 = arith.constant 0 : index
    %18 = vector.load %arg6[%c0_12, %c0_13] : memref<128x128xbf16, #tpu.memory_space<vmem>>, vector<128x128xbf16>
    %cst_14 = arith.constant dense<0.000000e+00> : vector<8x128xf32>
    %19 = tpu.matmul %17, %18, %cst_14 {dimension_numbers = #tpu.dot_dimension_numbers<[1], [0], [0], [1], [0, 0, 1, 1], [], []>} : vector<8x128xbf16>, vector<128x128xbf16>, vector<8x128xf32> -> vector<8x128xf32>
    %c0_15 = arith.constant 0 : index
    %c0_16 = arith.constant 0 : index
    %20 = vector.load %arg7[%c0_15, %c0_16] : memref<1x128xf32, #tpu.memory_space<vmem>>, vector<1x128xf32>
    %21 = vector.broadcast %20 : vector<1x128xf32> to vector<8x128xf32>
    %22 = arith.addf %19, %21 : vector<8x128xf32>
    %23 = arith.truncf %22 : vector<8x128xf32> to vector<8x128xbf16>
    %c0_17 = arith.constant 0 : index
    %c0_18 = arith.constant 0 : index
    %24 = vector.load %arg8[%c0_17, %c0_18] : memref<8x128xbf16, #tpu.memory_space<vmem>>, vector<8x128xbf16>
    tpu.vector_store %arg8[%c0_17, %c0_18], %23 {strides = array<i32>} : memref<8x128xbf16, #tpu.memory_space<vmem>>, vector<8x128xbf16>,
    return
  }
  func.func @transform_0(%arg0: i32) -> (i32, i32) {
    %c0_i32 = arith.constant 0 : i32
    %c0_i32_0 = arith.constant 0 : i32
    return %arg0, %c0_i32 : i32, i32
  }
  func.func @transform_1(%arg0: i32) -> (i32, i32) {
    %c0_i32 = arith.constant 0 : i32
    %c0_i32_0 = arith.constant 0 : i32
    %c0_i32_1 = arith.constant 0 : i32
    return %c0_i32, %c0_i32_0 : i32, i32
  }
  func.func @transform_2(%arg0: i32) -> (i32, i32) {
    %c0_i32 = arith.constant 0 : i32
    %c0_i32_0 = arith.constant 0 : i32
    %c0_i32_1 = arith.constant 0 : i32
    return %c0_i32, %c0_i32_0 : i32, i32
  }
  func.func @transform_3(%arg0: i32) -> (i32, i32) {
    %c0_i32 = arith.constant 0 : i32
    %c0_i32_0 = arith.constant 0 : i32
    %c0_i32_1 = arith.constant 0 : i32
    return %c0_i32, %c0_i32_0 : i32, i32
  }
  func.func @transform_4(%arg0: i32) -> (i32, i32) {
    %c0_i32 = arith.constant 0 : i32
    %c0_i32_0 = arith.constant 0 : i32
    %c0_i32_1 = arith.constant 0 : i32
    return %c0_i32, %c0_i32_0 : i32, i32
  }
  func.func @transform_5(%arg0: i32) -> (i32, i32) {
    %c0_i32 = arith.constant 0 : i32
    %c0_i32_0 = arith.constant 0 : i32
    %c0_i32_1 = arith.constant 0 : i32
    return %c0_i32, %c0_i32_0 : i32, i32
  }
  func.func @transform_6(%arg0: i32) -> (i32, i32) {
    %c0_i32 = arith.constant 0 : i32
    %c0_i32_0 = arith.constant 0 : i32
    %c0_i32_1 = arith.constant 0 : i32
    return %c0_i32, %c0_i32_0 : i32, i32
  }
  func.func @transform_7(%arg0: i32) -> (i32, i32) {
    %c0_i32 = arith.constant 0 : i32
    %c0_i32_0 = arith.constant 0 : i32
    return %arg0, %c0_i32 : i32, i32
  }
}

</mosaic_0001>

<bundles_post_ra>
// kernel: tpu_custom_call.1
= control target key start
LH: loop header
LB: loop body
LE: loop exit
PB: predicated region body
PF: predicated region fallthrough
CT: control target
= control target key end

     0   :  { %12 = vsyncpa [#allocation3], 0  ;;  %s1019_s0 = inlined_call_operand.hbm [shape: f32[8,400], index: 0, kind: input, shape index: {}]   ;;  %s1020_s1 = inlined_call_operand.hbm [shape: bf16[400,128], index: 1, kind: input, shape index: {}]   ;;  %s1021_s2 = inlined_call_operand.vmem [shape: f32[1,128], index: 2, kind: input, shape index: {}]   ;;  %s1022_s3 = inlined_call_operand.hbm [shape: bf16[128,128], index: 3, kind: input, shape index: {}]   ;;  %s1023_s4 = inlined_call_operand.vmem [shape: f32[1,128], index: 4, kind: input, shape index: {}]   ;;  %s1024_s5 = inlined_call_operand.hbm [shape: bf16[128,128], index: 5, kind: input, shape index: {}]   ;;  %s1025_s6 = inlined_call_operand.vmem [shape: f32[1,128], index: 6, kind: input, shape index: {}]   ;;  %s1026_s7 = inlined_call_operand.hbm [shape: bf16[8,128], index: 7, kind: output, shape index: {}]  }
   0x1   :  { %13 = vsyncpa [#allocation6], 0 }
   0x2   :  { %14 = vsyncpa [#allocation9], 0 }
   0x3   :  { %15 = vsyncpa [#allocation4], 0  ;;  %s909_s24 = smov [#allocation5]  }
   0x4   :  { %s31_s25 = sshll.u32 %s909_s24, 4  ;;  %s32_s25 = int_to_ptr.vmem [resolvable:$true] %s31_s25 }
   0x5   :  { %s809_s26 = scalar_lea.vmem %s32_s25, 3200  ;;  %p814_p1 = scmp.lt.s32.totalorder %s32_s25, %s32_s25 }
   0x6   :  { %p810_p0 = scmp.ne.s32.totalorder %s32_s25, %s809_s26  ;;  %p815_p2 = scmp.lt.s32.totalorder %s809_s26, %s809_s26 }
   0x8   :  { %p816_p3 = por %p815_p2, %p814_p1 }
   0xa   :  { %p817_p4 = pnand %p816_p3, %p810_p0 }
   0xc   :  { %820 = shalt.err (!%p817_p4)
}
   0xd   :  { %s910_s27 = smov 64   ;;  %s911_s28 = smov 4  }
   0xe   :  { %37 = dma.hbm_to_vmem [thread:$0]  %s1020_s1, 3200, %s32_s25, [#allocation6], %s910_s27, %s910_s27, %s911_s28  }
   0xf   :  { %s912_s8 = smov [#allocation2]   ;;  %s913_s10 = smov [#allocation7]  }
  0x10   :  { %s22_s9 = sshll.u32 %s912_s8, 4  ;;  %s45_s11 = sshll.u32 %s913_s10, 4  ;;  %s23_s9 = int_to_ptr.vmem [resolvable:$true] %s22_s9  ;;  %s46_s11 = int_to_ptr.vmem [resolvable:$true] %s45_s11 }
  0x11   :  { %s829_s12 = scalar_lea.vmem %s23_s9, 512  ;;  %p834_p6 = scmp.lt.s32.totalorder %s23_s9, %s23_s9 }
  0x12   :  { %p830_p5 = scmp.ne.s32.totalorder %s23_s9, %s829_s12  ;;  %p835_p7 = scmp.lt.s32.totalorder %s829_s12, %s829_s12 }
  0x14   :  { %p836_p8 = por %p835_p7, %p834_p6 }
  0x16   :  { %p837_p9 = pnand %p836_p8, %p830_p5 }
  0x18   :  { %840 = shalt.err (!%p837_p9)
}
  0x19   :  { %25 = dma.hbm_to_vmem [thread:$0]  %s1019_s0, 512, %s23_s9, [#allocation3]  }
  0x1a   :  { %s849_s15 = scalar_lea.vmem %s46_s11, 1024  ;;  %p854_p11 = scmp.lt.s32.totalorder %s46_s11, %s46_s11 }
  0x1b   :  { %p850_p10 = scmp.ne.s32.totalorder %s46_s11, %s849_s15  ;;  %p855_p12 = scmp.lt.s32.totalorder %s849_s15, %s849_s15 }
  0x1d   :  { %p856_p13 = por %p855_p12, %p854_p11 }
  0x1f   :  { %p857_p0 = pnand %p856_p13, %p850_p10 }
  0x21   :  { %860 = shalt.err (!%p857_p0)
}
  0x22   :  { %51 = dma.hbm_to_vmem [thread:$0]  %s1022_s3, 1024, %s46_s11, [#allocation6], %s910_s27, %s910_s27, %s911_s28  }
  0x23   :  { %s914_s17 = smov [#allocation8]  }
  0x24   :  { %s59_s18 = sshll.u32 %s914_s17, 4  ;;  %s60_s18 = int_to_ptr.vmem [resolvable:$true] %s59_s18 }
  0x25   :  { %s869_s19 = scalar_lea.vmem %s60_s18, 1024  ;;  %p874_p2 = scmp.lt.s32.totalorder %s60_s18, %s60_s18 }
  0x26   :  { %p870_p1 = scmp.ne.s32.totalorder %s60_s18, %s869_s19  ;;  %p875_p3 = scmp.lt.s32.totalorder %s869_s19, %s869_s19 }
  0x28   :  { %p876_p4 = por %p875_p3, %p874_p2 }
  0x2a   :  { %p877_p5 = pnand %p876_p4, %p870_p1 }
  0x2c   :  { %880 = shalt.err (!%p877_p5)
}
  0x2d   :  { %65 = dma.hbm_to_vmem [thread:$0]  %s1024_s5, 1024, %s60_s18, [#allocation9], %s910_s27, %s910_s27, %s911_s28  }
  0x2e   :  { %901 = dma.done.wait [#allocation3], 512  }
  0x2f   :  { %902 = vsyncadd [#allocation3], 4294966784 }
  0x30   :  { %903 = dma.done.wait [#allocation6], 4224  }
  0x31   :  { %904 = vsyncadd [#allocation6], 4294963072 }
  0x32   :  { %905 = dma.done.wait [#allocation9], 1024  }
  0x33   :  { %906 = vsyncadd [#allocation9], 4294966272  ;;  %v915_v0 = vmov 0   ;;  %v760_v1 = vld [vmem:[#allocation5 + $0x78] sm:$0xff]   ;;  %v763_v4 = vld [vmem:[#allocation5 + $0x70] sm:$0xff]   ;;  %vm296_vm0 = vcmask 130048  }
  0x34   :  { %340 = vmatprep.subr.bf16.mxu1 %v915_v0  ;;  %v761_v2 = vld [vmem:[#allocation5 + $0xb8] sm:$0xff]   ;;  %670 = vmatprep.subr.bf16.mxu0 %v760_v1  ;;  %v764_v5 = vld [vmem:[#allocation5 + $0xb0] sm:$0xff]   ;;  %v766_v7 = vld [vmem:[#allocation5 + $0x68] sm:$0xff]   ;;  %v916_v34 = vmov 0.0   ;;  %vm917_vm1 = vmmov 0   ;;  %s918_s24 = smov [#allocation10]  }
  0x35   :  { %v762_v3 = vld [vmem:[#allocation5 + $0x38] sm:$0xff]   ;;  %341 = vmatpush1.bf16.msra.mxu1 %v761_v2  ;;  %v765_v6 = vld [vmem:[#allocation5 + $0x30] sm:$0xff]   ;;  %v767_v8 = vld [vmem:[#allocation5 + $0xa8] sm:$0xff]   ;;  %s614_s25 = sshll.u32 %s918_s24, 4  ;;  %s615_s25 = int_to_ptr.vmem [resolvable:$true] %s614_s25 }
  0x36   :  { %671 = vmatpush3.bf16.msra.mxu0 %v762_v3  ;;  %342 = vmatprep.subr.bf16.mxu1 %v915_v0  ;;  %v768_v9 = vld [vmem:[#allocation5 + $0x28] sm:$0xff]   ;;  %v769_v10 = vld [vmem:[#allocation5 + $0x60] sm:$0xff]   ;;  %v772_v13 = vld [vmem:[#allocation5 + $0x58] sm:$0xff]   ;;  %p886_p7 = scmp.lt.s32.totalorder %s615_s25, %s615_s25 }
  0x37   :  { %672 = vmatprep.subr.bf16.mxu0 %v763_v4  ;;  %v770_v11 = vld [vmem:[#allocation5 + $0xa0] sm:$0xff]   ;;  %v773_v14 = vld [vmem:[#allocation5 + $0x98] sm:$0xff]   ;;  %v775_v16 = vld [vmem:[#allocation5 + $0x50] sm:$0xff]  }
  0x38   :  { %v771_v12 = vld [vmem:[#allocation5 + $0x20] sm:$0xff]   ;;  %v774_v15 = vld [vmem:[#allocation5 + $0x18] sm:$0xff]   ;;  %v776_v17 = vld [vmem:[#allocation5 + $0x90] sm:$0xff]  }
  0x39   :  { %343 = vmatpush1.bf16.msra.mxu1 %v764_v5  ;;  %v777_v18 = vld [vmem:[#allocation5 + $0x10] sm:$0xff]   ;;  %v778_v19 = vld [vmem:[#allocation5 + $0x48] sm:$0xff]   ;;  %v781_v23 = vld [vmem:[#allocation5 + $0x40] sm:$0xff]  }
  0x3a   :  { %673 = vmatpush3.bf16.msra.mxu0 %v765_v6  ;;  %344 = vmatprep.subr.bf16.mxu1 %v915_v0  ;;  %v779_v20 = vld [vmem:[#allocation5 + $0x88] sm:$0xff]   ;;  %v84_v25 = vld [vmem:[#allocation2 + $0x18] sm:$0xff]  ;;  %v782_v26 = vld [vmem:[#allocation5 + $0x80] sm:$0xff]  }
  0x3b   :  { %674 = vmatprep.subr.bf16.mxu0 %v766_v7  ;;  %v780_v21 = vld [vmem:[#allocation5 + $0x8] sm:$0xff]   ;;  %v88_v27 = vpack.c.bf16 %v84_v25, %v84_v25  ;;  %v783_v28 = vld [vmem:[#allocation5] sm:$0xff]   ;;  %v83_v31 = vld [vmem:[#allocation2 + $0x10] sm:$0xff] }
  0x3c   :  { %v82_v22 = vld [vmem:[#allocation2 + $0x8] sm:$0xff]  ;;  %v81_v29 = vld [vmem:[#allocation2] sm:$0xff]  ;;  %v87_v35 = vpack.c.bf16 %v83_v31, %v83_v31  ;;  %v786_v36 = vld [vmem:[#allocation7 + $0x30] sm:$0xff]  }
  0x3d   :  { %345 = vmatpush1.bf16.msra.mxu1 %v767_v8  ;;  %v86_v24 = vpack.c.bf16 %v82_v22, %v82_v22  ;;  %v784_v30 = vld [vmem:[#allocation5 + $0xc0] sm:$0xff]   ;;  %651 = vmatprep.mubr.msk.bf16.mxu1 %vm296_vm0, %v88_v27  ;;  %v85_v32 = vpack.c.bf16 %v81_v29, %v81_v29  ;;  %v787_v37 = vld [vmem:[#allocation7 + $0x28] sm:$0xff]   ;;  %v788_v38 = vld [vmem:[#allocation7 + $0x20] sm:$0xff]  }
  0x3e   :  { %675 = vmatpush3.bf16.msra.mxu0 %v768_v9  ;;  %346 = vmatprep.subr.bf16.mxu1 %v915_v0  ;;  %v785_v33 = vld [vmem:[#allocation7 + $0x38] sm:$0xff]   ;;  %v790_v40 = vld [vmem:[#allocation7 + $0x10] sm:$0xff]   ;;  %v791_v41 = vld [vmem:[#allocation7 + $0x8] sm:$0xff]  }
  0x3f   :  { %676 = vmatprep.subr.bf16.mxu0 %v769_v10  ;;  %332 = vmatprep.mubr.bf16.mxu0 %v86_v24  ;;  %v789_v39 = vld [vmem:[#allocation7 + $0x18] sm:$0xff]   ;;  %v792_v42 = vld [vmem:[#allocation7] sm:$0xff]   ;;  %v794_v44 = vld [vmem:[#allocation8 + $0x30] sm:$0xff]  }
  0x40   :  { %v793_v43 = vld [vmem:[#allocation8 + $0x38] sm:$0xff]   ;;  %v795_v45 = vld [vmem:[#allocation8 + $0x28] sm:$0xff]   ;;  %v796_v46 = vld [vmem:[#allocation8 + $0x20] sm:$0xff]  }
  0x41   :  { %347 = vmatpush1.bf16.msra.mxu1 %v770_v11  ;;  %v797_v47 = vld [vmem:[#allocation8 + $0x18] sm:$0xff]   ;;  %v798_v48 = vld [vmem:[#allocation8 + $0x10] sm:$0xff]   ;;  %v799_v63 = vld [vmem:[#allocation8 + $0x8] sm:$0xff]  }
  0x42   :  { %677 = vmatpush3.bf16.msra.mxu0 %v771_v12  ;;  %348 = vmatprep.subr.bf16.mxu1 %v915_v0  ;;  %v625_v51 = vld [vmem:[%s1021_s2] ss:$0 sm:$0xff] }
  0x43   :  { %678 = vmatprep.subr.bf16.mxu0 %v772_v13  ;;  %v652_v1 = vld [vmem:[%s1023_s4] ss:$0 sm:$0xff]  ;;  %s881_s4 = scalar_lea.vmem %s615_s25, 64 }
  0x44   :  { %v661_v9 = vld [vmem:[%s1025_s6] ss:$0 sm:$0xff]  ;;  %p882_p6 = scmp.ne.s32.totalorder %s615_s25, %s881_s4  ;;  %p887_p8 = scmp.lt.s32.totalorder %s881_s4, %s881_s4 }
  0x45   :  { %349 = vmatpush1.bf16.msra.mxu1 %v773_v14 }
  0x46   :  { %679 = vmatpush3.bf16.msra.mxu0 %v774_v15  ;;  %350 = vmatprep.subr.bf16.mxu1 %v915_v0  ;;  %p888_p9 = por %p887_p8, %p886_p7 }
  0x47   :  { %680 = vmatprep.subr.bf16.mxu0 %v775_v16 }
  0x48   :  { %p889_p10 = pnand %p888_p9, %p882_p6 }
  0x49   :  { %351 = vmatpush1.bf16.msra.mxu1 %v776_v17 }
  0x4a   :  { %681 = vmatpush3.bf16.msra.mxu0 %v777_v18  ;;  %352 = vmatprep.subr.bf16.mxu1 %v915_v0 }
  0x4b   :  { %682 = vmatprep.subr.bf16.mxu0 %v778_v19 }
  0x4d   :  { %353 = vmatpush1.bf16.msra.mxu1 %v779_v20 }
  0x4e   :  { %683 = vmatpush3.bf16.msra.mxu0 %v780_v21  ;;  %354 = vmatprep.subr.bf16.mxu1 %v915_v0 }
  0x4f   :  { %684 = vmatprep.subr.bf16.mxu0 %v781_v23 }
  0x51   :  { %355 = vmatpush1.bf16.msra.mxu1 %v782_v26 }
  0x52   :  { %685 = vmatpush3.bf16.msra.mxu0 %v783_v28  ;;  %370 = vmatprep.subr.bf16.mxu1 %v915_v0  ;;  %v800_v0 = vld [vmem:[#allocation8] sm:$0xff]  }
  0x53   :  { %710 = vmatprep.subr.bf16.mxu0 %v916_v34 }
  0x55   :  { %333 = vmatmul.mubr.bf16.vlgmr.msra.gmra.mxu0 %v85_v32  ;;  %371 = vmatpush2.bf16.msra.mxu1 %v784_v30 }
  0x56   :  { %711 = vmatpush3.bf16.msra.mxu0 %v785_v33  ;;  %730 = vmatprep.subr.bf16.mxu1 %v916_v34 }
  0x57   :  { %712 = vmatprep.subr.bf16.mxu0 %v916_v34  ;;  %726 = vmatprep.mubr.msk.bf16.mxu0 %vm917_vm1, %v916_v34 }
  0x58   :  { %373 = vmatmul.mubr.bf16.vlgmr.msra.gmra.mxu1 %v87_v35 }
  0x59   :  { %746 = vmatprep.mubr.msk.bf16.mxu1 %vm917_vm1, %v916_v34  ;;  %731 = vmatpush3.bf16.msra.mxu1 %v793_v43 }
  0x5a   :  { %713 = vmatpush3.bf16.msra.mxu0 %v786_v36  ;;  %732 = vmatprep.subr.bf16.mxu1 %v916_v34 }
  0x5b   :  { %714 = vmatprep.subr.bf16.mxu0 %v916_v34 }
  0x5d   :  { %733 = vmatpush3.bf16.msra.mxu1 %v794_v44 }
  0x5e   :  { %715 = vmatpush3.bf16.msra.mxu0 %v787_v37  ;;  %734 = vmatprep.subr.bf16.mxu1 %v916_v34 }
  0x5f   :  { %716 = vmatprep.subr.bf16.mxu0 %v916_v34 }
  0x61   :  { %735 = vmatpush3.bf16.msra.mxu1 %v795_v45 }
  0x62   :  { %717 = vmatpush3.bf16.msra.mxu0 %v788_v38  ;;  %736 = vmatprep.subr.bf16.mxu1 %v916_v34 }
  0x63   :  { %718 = vmatprep.subr.bf16.mxu0 %v916_v34 }
  0x65   :  { %737 = vmatpush3.bf16.msra.mxu1 %v796_v46 }
  0x66   :  { %719 = vmatpush3.bf16.msra.mxu0 %v789_v39  ;;  %738 = vmatprep.subr.bf16.mxu1 %v916_v34 }
  0x67   :  { %720 = vmatprep.subr.bf16.mxu0 %v916_v34 }
  0x69   :  { %739 = vmatpush3.bf16.msra.mxu1 %v797_v47 }
  0x6a   :  { %721 = vmatpush3.bf16.msra.mxu0 %v790_v40  ;;  %740 = vmatprep.subr.bf16.mxu1 %v916_v34 }
  0x6b   :  { %722 = vmatprep.subr.bf16.mxu0 %v916_v34 }
  0x6d   :  { %741 = vmatpush3.bf16.msra.mxu1 %v798_v48 }
  0x6e   :  { %723 = vmatpush3.bf16.msra.mxu0 %v791_v41  ;;  %742 = vmatprep.subr.bf16.mxu1 %v916_v34 }
  0x6f   :  { %724 = vmatprep.subr.bf16.mxu0 %v916_v34 }
  0x71   :  { %743 = vmatpush3.bf16.msra.mxu1 %v799_v63 }
  0x72   :  { %725 = vmatpush3.bf16.msra.mxu0 %v792_v42  ;;  %744 = vmatprep.subr.bf16.mxu1 %v916_v34 }
  0x75   :  { %745 = vmatpush3.bf16.msra.mxu1 %v800_v0 }
 0x115   :  { %v686_v49 = vpop.f32.mrf.mxu0 }
 0x117   :  { %v687_v50 = vpop.f32.mrf.mxu0 }
 0x118   :  { %v688_v52 = vadd.f32 %v687_v50, %v686_v49  ;;  %v374_v53 = vpop.f32.mrf.mxu1 }
 0x119   :  { %v689_v54 = vpop.f32.mrf.mxu0 }
 0x11a   :  { %v335_v55 = vadd.f32 %v688_v52, %v625_v51  ;;  %v376_v56 = vpop.f32.mrf.mxu1 }
 0x11b   :  { %v690_v57 = vpop.f32.mrf.mxu0 }
 0x11c   :  { %v375_v58 = vadd.f32 %v374_v53, %v335_v55  ;;  %v377_v59 = vpop.f32.mrf.mxu1 }
 0x11e   :  { %v380_v60 = vmax.f32 %v375_v58, 0.0  ;;  %v378_v61 = vpop.f32.mrf.mxu1 }
 0x120   :  { %v381_v62 = vpack.c.bf16 %v380_v60, %v380_v60 }
 0x122   :  { %727 = vmatmul.mubr.bf16.vlgmr.msra.gmra.mxu0 %v381_v62 }
 0x1e2   :  { %v487_v2 = vpop.f32.mrf.mxu0 }
 0x1e3   :  { %v488_v3 = vadd.f32 %v652_v1, %v487_v2 }
 0x1e4   :  { %v728_v4 = vpop.f32.mrf.mxu0 }
 0x1e5   :  { %v493_v5 = vmax.f32 %v488_v3, 0.0 }
 0x1e6   :  { %v490_v6 = vpop.f32.mrf.mxu0 }
 0x1e7   :  { %v494_v7 = vpack.c.bf16 %v493_v5, %v493_v5 }
 0x1e8   :  { %v729_v8 = vpop.f32.mrf.mxu0 }
 0x1e9   :  { %747 = vmatmul.mubr.bf16.vlgmr.msra.gmra.mxu1 %v494_v7 }
 0x2a9   :  { %v600_v10 = vpop.f32.mrf.mxu1 }
 0x2aa   :  { %v601_v11 = vadd.f32 %v661_v9, %v600_v10 }
 0x2ab   :  { %v748_v12 = vpop.f32.mrf.mxu1 }
 0x2ac   :  { %v606_v13 = vpack.c.bf16 %v601_v11, %v601_v11 }
 0x2ad   :  { %v603_v14 = vpop.f32.mrf.mxu1 }
 0x2ae   :  { %607 = vst [vmem:[#allocation10] sm:$0xf] %v606_v13 }
 0x2af   :  { %v749_v15 = vpop.f32.mrf.mxu1 }
 0x2b0   :  { %892 = shalt.err (!%p889_p10)
}
 0x2b1   :  { %617 = dma.vmem_to_hbm [thread:$0]  %s615_s25, 64, %s1026_s7, [#allocation4]  }
 0x2b2   :  { %907 = dma.done.wait [#allocation4], 64  }
 0x2b3   :  { %908 = vsyncadd [#allocation4], 4294967232 }
 0x2b4   :  { %621 = vsyncpa [#allocation3], 1 }
 0x2b5   :  { %622 = vsyncpa [#allocation6], 1 }
 0x2b6   :  { %623 = vsyncpa [#allocation9], 1 }
 0x2b7   :  { %624 = vsyncpa [#allocation4], 1 }

</bundles_post_ra>
